<compile_context>
chip_gen: v7x
topology: tpu7x:2x2x1
jax: 0.10.0
libtpu: 0.0.40
codegen_flags: <defaults>
</compile_context>

<pallas_src>
import functools

import jax
import jax.numpy as jnp
import numpy as np
from jax import lax
from jax.experimental import pallas as pl
from jax.experimental.pallas import tpu as pltpu


def _pick_tile(dim, candidates, align):
    """Largest candidate tile dividing `dim`; else the largest aligned divisor;
    else the full dim (a block equal to the full dim is always legal)."""
    for c in candidates:
        if c <= dim and dim % c == 0:
            return c
    upper = min(dim, max(candidates))
    for d in range(upper, 0, -1):
        if dim % d == 0 and d % align == 0:
            return d
    return dim


def _qag_kernel(nxt_ref, xyz_ref, aug_ref, newf_ref, gxyz_ref,
                cnt_ref, pt0_ref, *, radius, nsample, kg, tm, tn, c_tot):
    """Grid = (B, M_tiles, N_tiles); N innermost (reduction / streaming axis).

    nxt_ref:  (1, 3, TM)          centroids, transposed (M on lanes)
    xyz_ref:  (1, TN, 3)          point chunk, original layout (for distances)
    aug_ref:  (1, C+3, TN)        [xyz^T ; features] chunk (gather operand)
    newf_ref: (1, 1, C+3, K*TM)   output, used as the accumulator (slot-major)
    gxyz_ref: (1, 1, 3,   K*TM)   output (raw grouped xyz)
    cnt_ref:  (1, TM)             running per-centroid in-ball count (scratch)
    pt0_ref:  (C+3, 1)            data of global point 0, empty-ball fallback
    """
    ni = pl.program_id(2)
    num_n = pl.num_programs(2)

    @pl.when(ni == 0)
    def _init():
        newf_ref[...] = jnp.zeros_like(newf_ref)
        cnt_ref[...] = jnp.zeros_like(cnt_ref)
        pt0_ref[...] = aug_ref[0, :, 0:1].astype(jnp.float32)

    nxt = nxt_ref[0].astype(jnp.float32)            # (3, TM)
    xc = xyz_ref[0].astype(jnp.float32)             # (TN, 3)
    aug = aug_ref[0]                                # (C+3, TN)

    # Squared distances with M on lanes (matches the output layout).
    a2 = jnp.sum(nxt * nxt, axis=0, keepdims=True)                   # (1, TM)
    b2 = jnp.sum(xc * xc, axis=1, keepdims=True)                     # (TN, 1)
    cross = lax.dot_general(xc, nxt, (((1,), (0,)), ((), ())),
                            preferred_element_type=jnp.float32)      # (TN, TM)
    d2 = a2 + b2 - 2.0 * cross
    valid = d2 < radius * radius                                     # (TN, TM)
    maskf = valid.astype(jnp.float32)

    # Within-chunk inclusive prefix count along the point axis via a (TN, TN)
    # lower-triangular matmul (bounded by the tile, not N).  Adding the carried
    # count from previous chunks turns it into the global 1-based rank.
    # Rank/count stay f32 (exact integers) -- never bf16.
    i_ = lax.broadcasted_iota(jnp.int32, (tn, tn), 0)
    j_ = lax.broadcasted_iota(jnp.int32, (tn, tn), 1)
    tril = (j_ <= i_).astype(jnp.float32)                            # (TN, TN)
    rank = lax.dot_general(tril, maskf, (((1,), (0,)), ((), ())),
                           preferred_element_type=jnp.float32)       # (TN, TM)
    prev = cnt_ref[...]                                              # (1, TM)
    grank = rank + prev
    cnt_ref[...] = prev + jnp.sum(maskf, axis=0, keepdims=True)

    # Gather KG neighbour slots per MXU call: one (C+3, TN) x (TN, KG*TM)
    # matmul per group, accumulated into the lane-dense output block.
    # (<= 8 static group iterations; each group's temporaries die at the +=.)
    n_groups = nsample // kg
    for g in range(n_groups):
        base = g * kg
        parts = [
            (valid & (grank == float(base + jj + 1))).astype(aug.dtype)
            for jj in range(kg)
        ]
        selg = parts[0] if kg == 1 else jnp.concatenate(parts, axis=1)
        got = lax.dot_general(aug, selg, (((1,), (0,)), ((), ())),
                              preferred_element_type=jnp.float32)    # (C+3, KG*TM)
        newf_ref[0, 0, :, base * tm:(base + kg) * tm] += got

    @pl.when(ni == num_n - 1)
    def _finalize():
        cnt = cnt_ref[...]                                           # (1, TM)
        acc0 = newf_ref[0, 0, :, 0:tm]                 # first in-ball point
        pt0 = jnp.broadcast_to(pt0_ref[...], (c_tot, tm))            # point 0
        fb = jnp.where(cnt > 0.0, acc0, pt0)           # ball_query padding
        nxt_pad = jnp.concatenate(
            [nxt, jnp.zeros((c_tot - 3, tm), jnp.float32)], axis=0)  # (C+3, TM)
        for j in range(nsample):
            sl = slice(j * tm, (j + 1) * tm)
            col = newf_ref[0, 0, :, sl]
            val = jnp.where(cnt > float(j), col, fb)
            gxyz_ref[0, 0, :, sl] = val[0:3, :]
            newf_ref[0, 0, :, sl] = val - nxt_pad


def query_and_group(xyz, new_xyz, features, *, radius, nsample):
    """Pallas QueryAndGroup.forward (ball-query path, use_xyz=True, features
    provided, return_idx=False)."""
    # TODO(synk): KNN fallback (radius=None), features=None / use_xyz=False and
    # return_idx paths are not implemented.
    b, n, _ = xyz.shape
    m = new_xyz.shape[1]
    c = features.shape[1]
    c_tot = c + 3
    nsample = int(nsample)

    # Features keep their input dtype (bf16 stays bf16); 0/1 selections are
    # exact in any dtype and the gather matmul accumulates in f32.
    aug_dtype = jnp.promote_types(xyz.dtype, features.dtype)
    aug = jnp.concatenate(
        [jnp.transpose(xyz, (0, 2, 1)).astype(aug_dtype),
         features.astype(aug_dtype)], axis=1)                         # (B, C+3, N)
    new_xyz_t = jnp.transpose(new_xyz, (0, 2, 1)).astype(jnp.float32)  # (B, 3, M)
    xyz_f = xyz.astype(jnp.float32)                                    # (B, N, 3)

    # Tiling: M on lanes (128-aligned when possible), N streamed in chunks so
    # the per-chunk (TN, TN) prefix matmul and temporaries stay small (fits
    # comfortably inside v7x's 64 MiB VMEM as well).
    # TODO(synk): pad N/M for shapes with no 128-aligned divisor instead of
    # falling back to full-dim blocks.
    tm = _pick_tile(m, (256, 128), 128)
    tn = _pick_tile(n, (256, 512, 128), 128)
    kg = next(d for d in (8, 4, 2, 1) if nsample % d == 0)
    mt = m // tm
    nt = n // tn

    # Explicit scoped-VMEM budget sized to the chosen tiles (with headroom).
    itemsize = np.dtype(aug_dtype).itemsize
    blk = (2 * c_tot * tn * itemsize                 # aug chunk (double-buffered)
           + 2 * tn * 128 * 4                        # xyz chunk (lane padded)
           + 2 * 8 * max(tm, 128) * 4                # centroid block
           + 2 * (c_tot + 3) * nsample * tm * 4)     # output blocks
    tmp = (tn * tn + 12 * tn * tm + 2 * tn * kg * tm + 2 * c_tot * kg * tm) * 4
    vmem_limit = int(min(max(2 * (blk + tmp), 32 << 20), 64 << 20))

    kernel = functools.partial(
        _qag_kernel, radius=float(radius), nsample=nsample,
        kg=kg, tm=tm, tn=tn, c_tot=c_tot)

    newf_flat, gxyz_flat = pl.pallas_call(
        kernel,
        out_shape=(
            jax.ShapeDtypeStruct((b, mt, c_tot, nsample * tm), jnp.float32),
            jax.ShapeDtypeStruct((b, mt, 3, nsample * tm), jnp.float32),
        ),
        grid_spec=pltpu.PrefetchScalarGridSpec(
            num_scalar_prefetch=0,
            grid=(b, mt, nt),
            in_specs=[
                pl.BlockSpec((1, 3, tm), lambda bi, mi, ni: (bi, 0, mi)),
                pl.BlockSpec((1, tn, 3), lambda bi, mi, ni: (bi, ni, 0)),
                pl.BlockSpec((1, c_tot, tn), lambda bi, mi, ni: (bi, 0, ni)),
            ],
            out_specs=[
                pl.BlockSpec((1, 1, c_tot, nsample * tm),
                             lambda bi, mi, ni: (bi, mi, 0, 0)),
                pl.BlockSpec((1, 1, 3, nsample * tm),
                             lambda bi, mi, ni: (bi, mi, 0, 0)),
            ],
            scratch_shapes=[
                pltpu.VMEM((1, tm), jnp.float32),      # running in-ball count
                pltpu.VMEM((c_tot, 1), jnp.float32),   # point-0 fallback data
            ],
        ),
        compiler_params=pltpu.CompilerParams(
            dimension_semantics=("parallel", "parallel", "arbitrary"),
            vmem_limit_bytes=vmem_limit),
    )(new_xyz_t, xyz_f, aug)

    # Back to the PyTorch convention (B, C+3, M, K) / (B, 3, M, K).  The kernel
    # emits lane-dense slot-major slabs; this is a single fused
    # reshape+transpose in XLA.  Consumers that accept the (..., K, M) layout
    # can skip it.
    newf = newf_flat.reshape(b, mt, c_tot, nsample, tm)
    newf = jnp.transpose(newf, (0, 2, 1, 4, 3)).reshape(b, c_tot, m, nsample)
    gxyz = gxyz_flat.reshape(b, mt, 3, nsample, tm)
    gxyz = jnp.transpose(gxyz, (0, 2, 1, 4, 3)).reshape(b, 3, m, nsample)
    return newf.astype(aug_dtype), gxyz.astype(xyz.dtype)


def reference(xyz, new_xyz, features, radius, nsample):
    """Pure-JAX reference (same ball-query + grouping semantics)."""
    b, n, _ = xyz.shape
    a2 = jnp.sum(new_xyz * new_xyz, axis=-1)[:, :, None]
    b2 = jnp.sum(xyz * xyz, axis=-1)[:, None, :]
    cross = jnp.einsum("bmd,bnd->bmn", new_xyz, xyz)
    d2 = a2 + b2 - 2.0 * cross
    mask = d2 < radius * radius                                        # (B, M, N)

    def per_center(mrow):
        idxs = jnp.where(mrow, jnp.arange(n), n)
        order = jnp.sort(idxs)[:nsample]
        first = jnp.where(mrow.any(), jnp.argmax(mrow), 0)
        return jnp.where(order >= n, first, order)

    idx = jax.vmap(jax.vmap(per_center))(mask)                         # (B, M, K)

    def group(feats, ind):  # feats (C, N), ind (M, K)
        return feats[:, ind]

    gxyz = jax.vmap(group)(jnp.transpose(xyz, (0, 2, 1)), idx)         # (B, 3, M, K)
    diff = gxyz - jnp.transpose(new_xyz, (0, 2, 1))[..., None]
    gfeat = jax.vmap(group)(features, idx)                             # (B, C, M, K)
    newf = jnp.concatenate([diff, gfeat], axis=1)
    return newf, gxyz


if __name__ == "__main__":
    key = jax.random.PRNGKey(0)
    b, n, m, c, nsample = 2, 16, 8, 4, 8
    radius = 0.6

    k1, k2, k3 = jax.random.split(key, 3)
    xyz = jax.random.uniform(k1, (b, n, 3), dtype=jnp.float32)
    new_xyz = jax.random.uniform(k2, (b, m, 3), dtype=jnp.float32)
    features = jax.random.normal(k3, (b, c, n), dtype=jnp.float32)

    new_features, grouped_xyz = query_and_group(
        xyz, new_xyz, features, radius=radius, nsample=nsample)
    jax.block_until_ready((new_features, grouped_xyz))

    assert new_features.shape == (b, c + 3, m, nsample)
    assert grouped_xyz.shape == (b, 3, m, nsample)

    ref_newf, ref_gxyz = reference(xyz, new_xyz, features, radius, nsample)
    np.testing.assert_allclose(np.asarray(grouped_xyz), np.asarray(ref_gxyz),
                               rtol=1e-5, atol=1e-5)
    np.testing.assert_allclose(np.asarray(new_features), np.asarray(ref_newf),
                               rtol=1e-5, atol=1e-5)

    print("KERNEL_OK")
</pallas_src>

<mosaic_0001>
module attributes {stable_mosaic.version = 11 : i64} {
  func.func @_qag_kernel(%arg0: i32, %arg1: i32, %arg2: i32, %arg3: memref<1x3x8xf32, #tpu.memory_space<vmem>>, %arg4: memref<1x16x3xf32, #tpu.memory_space<vmem>>, %arg5: memref<1x7x16xf32, #tpu.memory_space<vmem>>, %arg6: memref<1x1x7x64xf32, #tpu.memory_space<vmem>>, %arg7: memref<1x1x3x64xf32, #tpu.memory_space<vmem>>, %arg8: memref<1x8xf32, #tpu.memory_space<vmem>>, %arg9: memref<7x1xf32, #tpu.memory_space<vmem>>) attributes {dimension_semantics = [#tpu.dimension_semantics<parallel>, #tpu.dimension_semantics<parallel>, #tpu.dimension_semantics<arbitrary>], iteration_bounds = array<i64: 2, 1, 1>, scalar_prefetch = 0 : i64, scratch_operands = 2 : i64, tpu.core_type = #tpu.core_type<tc>, window_params = [{transform_indices = @transform_0, window_bounds = array<i64: 1, 3, 8>}, {transform_indices = @transform_1, window_bounds = array<i64: 1, 16, 3>}, {transform_indices = @transform_2, window_bounds = array<i64: 1, 7, 16>}, {transform_indices = @transform_3, window_bounds = array<i64: 1, 1, 7, 64>}, {transform_indices = @transform_4, window_bounds = array<i64: 1, 1, 3, 64>}]} {
    %c0_i32 = arith.constant 0 : i32
    %0 = arith.cmpi eq, %arg2, %c0_i32 : i32
    %1 = arith.extui %0 : i1 to i32
    %c0_i32_0 = arith.constant 0 : i32
    %2 = arith.cmpi ne, %1, %c0_i32_0 : i32
    scf.if %2 {
      %cst_38 = arith.constant 0.000000e+00 : f32
      %90 = vector.broadcast %cst_38 : f32 to vector<1x1x7x64xf32>
      %c0_39 = arith.constant 0 : index
      %c0_40 = arith.constant 0 : index
      %c0_41 = arith.constant 0 : index
      %c0_42 = arith.constant 0 : index
      %91 = vector.load %arg6[%c0_39, %c0_40, %c0_41, %c0_42] : memref<1x1x7x64xf32, #tpu.memory_space<vmem>>, vector<1x1x7x64xf32>
      tpu.vector_store %arg6[%c0_39, %c0_40, %c0_41, %c0_42], %90 {strides = array<i32>} : memref<1x1x7x64xf32, #tpu.memory_space<vmem>>, vector<1x1x7x64xf32>,
      %cst_43 = arith.constant 0.000000e+00 : f32
      %92 = vector.broadcast %cst_43 : f32 to vector<1x8xf32>
      %c0_44 = arith.constant 0 : index
      %c0_45 = arith.constant 0 : index
      %93 = vector.load %arg8[%c0_44, %c0_45] : memref<1x8xf32, #tpu.memory_space<vmem>>, vector<1x8xf32>
      tpu.vector_store %arg8[%c0_44, %c0_45], %92 {strides = array<i32>} : memref<1x8xf32, #tpu.memory_space<vmem>>, vector<1x8xf32>,
      %c0_46 = arith.constant 0 : index
      %c0_47 = arith.constant 0 : index
      %c0_48 = arith.constant 0 : index
      %94 = vector.load %arg5[%c0_46, %c0_47, %c0_48] : memref<1x7x16xf32, #tpu.memory_space<vmem>>, vector<1x7x1xf32>
      %95 = vector.shape_cast %94 : vector<1x7x1xf32> to vector<7x1xf32>
      %c0_49 = arith.constant 0 : index
      %c0_50 = arith.constant 0 : index
      %96 = vector.load %arg9[%c0_49, %c0_50] : memref<7x1xf32, #tpu.memory_space<vmem>>, vector<7x1xf32>
      tpu.vector_store %arg9[%c0_49, %c0_50], %95 {strides = array<i32>} : memref<7x1xf32, #tpu.memory_space<vmem>>, vector<7x1xf32>,
    } else {
    }
    %c0 = arith.constant 0 : index
    %c0_1 = arith.constant 0 : index
    %c0_2 = arith.constant 0 : index
    %3 = vector.load %arg3[%c0, %c0_1, %c0_2] : memref<1x3x8xf32, #tpu.memory_space<vmem>>, vector<1x3x8xf32>
    %4 = vector.shape_cast %3 : vector<1x3x8xf32> to vector<3x8xf32>
    %c0_3 = arith.constant 0 : index
    %c0_4 = arith.constant 0 : index
    %c0_5 = arith.constant 0 : index
    %5 = vector.load %arg4[%c0_3, %c0_4, %c0_5] : memref<1x16x3xf32, #tpu.memory_space<vmem>>, vector<1x16x3xf32>
    %6 = vector.shape_cast %5 : vector<1x16x3xf32> to vector<16x3xf32>
    %c0_6 = arith.constant 0 : index
    %c0_7 = arith.constant 0 : index
    %c0_8 = arith.constant 0 : index
    %7 = vector.load %arg5[%c0_6, %c0_7, %c0_8] : memref<1x7x16xf32, #tpu.memory_space<vmem>>, vector<1x7x16xf32>
    %8 = vector.shape_cast %7 : vector<1x7x16xf32> to vector<7x16xf32>
    %9 = arith.mulf %4, %4 : vector<3x8xf32>
    %cst = arith.constant dense<0.000000e+00> : vector<8xf32>
    %10 = vector.multi_reduction <add>, %9, %cst [0] : vector<3x8xf32> to vector<8xf32>
    %11 = vector.shape_cast %10 : vector<8xf32> to vector<1x8xf32>
    %12 = arith.mulf %6, %6 : vector<16x3xf32>
    %cst_9 = arith.constant dense<0.000000e+00> : vector<16xf32>
    %13 = vector.multi_reduction <add>, %12, %cst_9 [1] : vector<16x3xf32> to vector<16xf32>
    %14 = vector.shape_cast %13 : vector<16xf32> to vector<16x1xf32>
    %cst_10 = arith.constant dense<0.000000e+00> : vector<16x8xf32>
    %15 = tpu.matmul %6, %4, %cst_10 {dimension_numbers = #tpu.dot_dimension_numbers<[1], [0], [0], [1], [0, 0, 1, 1], [], []>} : vector<16x3xf32>, vector<3x8xf32>, vector<16x8xf32> -> vector<16x8xf32>
    %16 = vector.broadcast %11 : vector<1x8xf32> to vector<16x8xf32>
    %17 = vector.broadcast %14 : vector<16x1xf32> to vector<16x8xf32>
    %18 = arith.addf %16, %17 : vector<16x8xf32>
    %cst_11 = arith.constant 2.000000e+00 : f32
    %19 = vector.broadcast %cst_11 : f32 to vector<16x8xf32>
    %20 = arith.mulf %19, %15 : vector<16x8xf32>
    %21 = arith.subf %18, %20 : vector<16x8xf32>
    %cst_12 = arith.constant 3.600000e-01 : f32
    %22 = vector.broadcast %cst_12 : f32 to vector<16x8xf32>
    %23 = arith.cmpf olt, %21, %22 : vector<16x8xf32>
    %24 = arith.extui %23 : vector<16x8xi1> to vector<16x8xi32>
    %25 = arith.sitofp %24 : vector<16x8xi32> to vector<16x8xf32>
    %26 = tpu.iota {dimensions = array<i32: 0>} : vector<16x16xi32>
    %27 = tpu.iota {dimensions = array<i32: 1>} : vector<16x16xi32>
    %28 = arith.cmpi sle, %27, %26 : vector<16x16xi32>
    %29 = arith.extui %28 : vector<16x16xi1> to vector<16x16xi32>
    %30 = arith.sitofp %29 : vector<16x16xi32> to vector<16x16xf32>
    %cst_13 = arith.constant dense<0.000000e+00> : vector<16x8xf32>
    %31 = tpu.matmul %30, %25, %cst_13 {dimension_numbers = #tpu.dot_dimension_numbers<[1], [0], [0], [1], [0, 0, 1, 1], [], []>} : vector<16x16xf32>, vector<16x8xf32>, vector<16x8xf32> -> vector<16x8xf32>
    %c0_14 = arith.constant 0 : index
    %c0_15 = arith.constant 0 : index
    %32 = vector.load %arg8[%c0_14, %c0_15] : memref<1x8xf32, #tpu.memory_space<vmem>>, vector<1x8xf32>
    %33 = vector.broadcast %32 : vector<1x8xf32> to vector<16x8xf32>
    %34 = arith.addf %31, %33 : vector<16x8xf32>
    %cst_16 = arith.constant dense<0.000000e+00> : vector<8xf32>
    %35 = vector.multi_reduction <add>, %25, %cst_16 [0] : vector<16x8xf32> to vector<8xf32>
    %36 = vector.shape_cast %35 : vector<8xf32> to vector<1x8xf32>
    %37 = arith.addf %32, %36 : vector<1x8xf32>
    %c0_17 = arith.constant 0 : index
    %c0_18 = arith.constant 0 : index
    %38 = vector.load %arg8[%c0_17, %c0_18] : memref<1x8xf32, #tpu.memory_space<vmem>>, vector<1x8xf32>
    tpu.vector_store %arg8[%c0_17, %c0_18], %37 {strides = array<i32>} : memref<1x8xf32, #tpu.memory_space<vmem>>, vector<1x8xf32>,
    %cst_19 = arith.constant 1.000000e+00 : f32
    %39 = vector.broadcast %cst_19 : f32 to vector<16x8xf32>
    %40 = arith.cmpf oeq, %34, %39 : vector<16x8xf32>
    %41 = arith.andi %23, %40 : vector<16x8xi1>
    %42 = arith.extui %41 : vector<16x8xi1> to vector<16x8xi32>
    %43 = arith.sitofp %42 : vector<16x8xi32> to vector<16x8xf32>
    %cst_20 = arith.constant 2.000000e+00 : f32
    %44 = vector.broadcast %cst_20 : f32 to vector<16x8xf32>
    %45 = arith.cmpf oeq, %34, %44 : vector<16x8xf32>
    %46 = arith.andi %23, %45 : vector<16x8xi1>
    %47 = arith.extui %46 : vector<16x8xi1> to vector<16x8xi32>
    %48 = arith.sitofp %47 : vector<16x8xi32> to vector<16x8xf32>
    %cst_21 = arith.constant 3.000000e+00 : f32
    %49 = vector.broadcast %cst_21 : f32 to vector<16x8xf32>
    %50 = arith.cmpf oeq, %34, %49 : vector<16x8xf32>
    %51 = arith.andi %23, %50 : vector<16x8xi1>
    %52 = arith.extui %51 : vector<16x8xi1> to vector<16x8xi32>
    %53 = arith.sitofp %52 : vector<16x8xi32> to vector<16x8xf32>
    %cst_22 = arith.constant 4.000000e+00 : f32
    %54 = vector.broadcast %cst_22 : f32 to vector<16x8xf32>
    %55 = arith.cmpf oeq, %34, %54 : vector<16x8xf32>
    %56 = arith.andi %23, %55 : vector<16x8xi1>
    %57 = arith.extui %56 : vector<16x8xi1> to vector<16x8xi32>
    %58 = arith.sitofp %57 : vector<16x8xi32> to vector<16x8xf32>
    %cst_23 = arith.constant 5.000000e+00 : f32
    %59 = vector.broadcast %cst_23 : f32 to vector<16x8xf32>
    %60 = arith.cmpf oeq, %34, %59 : vector<16x8xf32>
    %61 = arith.andi %23, %60 : vector<16x8xi1>
    %62 = arith.extui %61 : vector<16x8xi1> to vector<16x8xi32>
    %63 = arith.sitofp %62 : vector<16x8xi32> to vector<16x8xf32>
    %cst_24 = arith.constant 6.000000e+00 : f32
    %64 = vector.broadcast %cst_24 : f32 to vector<16x8xf32>
    %65 = arith.cmpf oeq, %34, %64 : vector<16x8xf32>
    %66 = arith.andi %23, %65 : vector<16x8xi1>
    %67 = arith.extui %66 : vector<16x8xi1> to vector<16x8xi32>
    %68 = arith.sitofp %67 : vector<16x8xi32> to vector<16x8xf32>
    %cst_25 = arith.constant 7.000000e+00 : f32
    %69 = vector.broadcast %cst_25 : f32 to vector<16x8xf32>
    %70 = arith.cmpf oeq, %34, %69 : vector<16x8xf32>
    %71 = arith.andi %23, %70 : vector<16x8xi1>
    %72 = arith.extui %71 : vector<16x8xi1> to vector<16x8xi32>
    %73 = arith.sitofp %72 : vector<16x8xi32> to vector<16x8xf32>
    %cst_26 = arith.constant 8.000000e+00 : f32
    %74 = vector.broadcast %cst_26 : f32 to vector<16x8xf32>
    %75 = arith.cmpf oeq, %34, %74 : vector<16x8xf32>
    %76 = arith.andi %23, %75 : vector<16x8xi1>
    %77 = arith.extui %76 : vector<16x8xi1> to vector<16x8xi32>
    %78 = arith.sitofp %77 : vector<16x8xi32> to vector<16x8xf32>
    %79 = tpu.concatenate %43, %48, %53, %58, %63, %68, %73, %78 in 1 : vector<16x8xf32>, vector<16x8xf32>, vector<16x8xf32>, vector<16x8xf32>, vector<16x8xf32>, vector<16x8xf32>, vector<16x8xf32>, vector<16x8xf32> -> vector<16x64xf32>
    %cst_27 = arith.constant dense<0.000000e+00> : vector<7x64xf32>
    %80 = tpu.matmul %8, %79, %cst_27 {dimension_numbers = #tpu.dot_dimension_numbers<[1], [0], [0], [1], [0, 0, 1, 1], [], []>} : vector<7x16xf32>, vector<16x64xf32>, vector<7x64xf32> -> vector<7x64xf32>
    %c0_28 = arith.constant 0 : index
    %c0_29 = arith.constant 0 : index
    %c0_30 = arith.constant 0 : index
    %c0_31 = arith.constant 0 : index
    %81 = vector.load %arg6[%c0_28, %c0_29, %c0_30, %c0_31] : memref<1x1x7x64xf32, #tpu.memory_space<vmem>>, vector<1x1x7x64xf32>
    %82 = vector.shape_cast %81 : vector<1x1x7x64xf32> to vector<7x64xf32>
    %83 = arith.addf %82, %80 : vector<7x64xf32>
    %c0_32 = arith.constant 0 : index
    %c0_33 = arith.constant 0 : index
    %c0_34 = arith.constant 0 : index
    %c0_35 = arith.constant 0 : index
    %84 = vector.load %arg6[%c0_32, %c0_33, %c0_34, %c0_35] : memref<1x1x7x64xf32, #tpu.memory_space<vmem>>, vector<1x1x7x64xf32>
    %85 = vector.shape_cast %84 : vector<1x1x7x64xf32> to vector<7x64xf32>
    %86 = vector.shape_cast %83 : vector<7x64xf32> to vector<1x1x7x64xf32>
    tpu.vector_store %arg6[%c0_32, %c0_33, %c0_34, %c0_35], %86 {strides = array<i32>} : memref<1x1x7x64xf32, #tpu.memory_space<vmem>>, vector<1x1x7x64xf32>,
    %c0_i32_36 = arith.constant 0 : i32
    %87 = arith.cmpi eq, %arg2, %c0_i32_36 : i32
    %88 = arith.extui %87 : i1 to i32
    %c0_i32_37 = arith.constant 0 : i32
    %89 = arith.cmpi ne, %88, %c0_i32_37 : i32
    scf.if %89 {
      %c0_38 = arith.constant 0 : index
      %c0_39 = arith.constant 0 : index
      %90 = vector.load %arg8[%c0_38, %c0_39] : memref<1x8xf32, #tpu.memory_space<vmem>>, vector<1x8xf32>
      %c0_40 = arith.constant 0 : index
      %c0_41 = arith.constant 0 : index
      %c0_42 = arith.constant 0 : index
      %c0_43 = arith.constant 0 : index
      %91 = vector.load %arg6[%c0_40, %c0_41, %c0_42, %c0_43] : memref<1x1x7x64xf32, #tpu.memory_space<vmem>>, vector<1x1x7x8xf32>
      %92 = vector.shape_cast %91 : vector<1x1x7x8xf32> to vector<7x8xf32>
      %c0_44 = arith.constant 0 : index
      %c0_45 = arith.constant 0 : index
      %93 = vector.load %arg9[%c0_44, %c0_45] : memref<7x1xf32, #tpu.memory_space<vmem>>, vector<7x1xf32>
      %94 = vector.shape_cast %93 : vector<7x1xf32> to vector<7x1xf32>
      %95 = vector.broadcast %94 : vector<7x1xf32> to vector<7x8xf32>
      %cst_46 = arith.constant 0.000000e+00 : f32
      %96 = vector.broadcast %cst_46 : f32 to vector<1x8xf32>
      %97 = arith.cmpf ogt, %90, %96 : vector<1x8xf32>
      %98 = vector.shape_cast %97 : vector<1x8xi1> to vector<1x8xi1>
      %99 = vector.broadcast %98 : vector<1x8xi1> to vector<7x8xi1>
      %100 = arith.select %99, %92, %95 : vector<7x8xi1>, vector<7x8xf32>
      %cst_47 = arith.constant 0.000000e+00 : f32
      %101 = vector.broadcast %cst_47 : f32 to vector<4x8xf32>
      %102 = tpu.concatenate %4, %101 in 0 : vector<3x8xf32>, vector<4x8xf32> -> vector<7x8xf32>
      %c0_48 = arith.constant 0 : index
      %c0_49 = arith.constant 0 : index
      %c0_50 = arith.constant 0 : index
      %c0_51 = arith.constant 0 : index
      %103 = vector.load %arg6[%c0_48, %c0_49, %c0_50, %c0_51] : memref<1x1x7x64xf32, #tpu.memory_space<vmem>>, vector<1x1x7x8xf32>
      %104 = vector.shape_cast %103 : vector<1x1x7x8xf32> to vector<7x8xf32>
      %cst_52 = arith.constant 0.000000e+00 : f32
      %105 = vector.broadcast %cst_52 : f32 to vector<1x8xf32>
      %106 = arith.cmpf ogt, %90, %105 : vector<1x8xf32>
      %107 = vector.shape_cast %106 : vector<1x8xi1> to vector<1x8xi1>
      %108 = vector.broadcast %107 : vector<1x8xi1> to vector<7x8xi1>
      %109 = arith.select %108, %104, %100 : vector<7x8xi1>, vector<7x8xf32>
      %110 = vector.extract_strided_slice %109 {offsets = [0, 0], sizes = [3, 8], strides = [1, 1]} : vector<7x8xf32> to vector<3x8xf32>
      %c0_53 = arith.constant 0 : index
      %c0_54 = arith.constant 0 : index
      %c0_55 = arith.constant 0 : index
      %c0_56 = arith.constant 0 : index
      %111 = vector.load %arg7[%c0_53, %c0_54, %c0_55, %c0_56] : memref<1x1x3x64xf32, #tpu.memory_space<vmem>>, vector<1x1x3x8xf32>
      %112 = vector.shape_cast %111 : vector<1x1x3x8xf32> to vector<3x8xf32>
      %113 = vector.shape_cast %110 : vector<3x8xf32> to vector<1x1x3x8xf32>
      tpu.vector_store %arg7[%c0_53, %c0_54, %c0_55, %c0_56], %113 {strides = array<i32>} : memref<1x1x3x64xf32, #tpu.memory_space<vmem>>, vector<1x1x3x8xf32>,
      %114 = arith.subf %109, %102 : vector<7x8xf32>
      %c0_57 = arith.constant 0 : index
      %c0_58 = arith.constant 0 : index
      %c0_59 = arith.constant 0 : index
      %c0_60 = arith.constant 0 : index
      %115 = vector.load %arg6[%c0_57, %c0_58, %c0_59, %c0_60] : memref<1x1x7x64xf32, #tpu.memory_space<vmem>>, vector<1x1x7x8xf32>
      %116 = vector.shape_cast %115 : vector<1x1x7x8xf32> to vector<7x8xf32>
      %117 = vector.shape_cast %114 : vector<7x8xf32> to vector<1x1x7x8xf32>
      tpu.vector_store %arg6[%c0_57, %c0_58, %c0_59, %c0_60], %117 {strides = array<i32>} : memref<1x1x7x64xf32, #tpu.memory_space<vmem>>, vector<1x1x7x8xf32>,
      %c0_61 = arith.constant 0 : index
      %c0_62 = arith.constant 0 : index
      %c0_63 = arith.constant 0 : index
      %c8 = arith.constant 8 : index
      %118 = vector.load %arg6[%c0_61, %c0_62, %c0_63, %c8] : memref<1x1x7x64xf32, #tpu.memory_space<vmem>>, vector<1x1x7x8xf32>
      %119 = vector.shape_cast %118 : vector<1x1x7x8xf32> to vector<7x8xf32>
      %cst_64 = arith.constant 1.000000e+00 : f32
      %120 = vector.broadcast %cst_64 : f32 to vector<1x8xf32>
      %121 = arith.cmpf ogt, %90, %120 : vector<1x8xf32>
      %122 = vector.shape_cast %121 : vector<1x8xi1> to vector<1x8xi1>
      %123 = vector.broadcast %122 : vector<1x8xi1> to vector<7x8xi1>
      %124 = arith.select %123, %119, %100 : vector<7x8xi1>, vector<7x8xf32>
      %125 = vector.extract_strided_slice %124 {offsets = [0, 0], sizes = [3, 8], strides = [1, 1]} : vector<7x8xf32> to vector<3x8xf32>
      %c0_65 = arith.constant 0 : index
      %c0_66 = arith.constant 0 : index
      %c0_67 = arith.constant 0 : index
      %c8_68 = arith.constant 8 : index
      %126 = vector.load %arg7[%c0_65, %c0_66, %c0_67, %c8_68] : memref<1x1x3x64xf32, #tpu.memory_space<vmem>>, vector<1x1x3x8xf32>
      %127 = vector.shape_cast %126 : vector<1x1x3x8xf32> to vector<3x8xf32>
      %128 = vector.shape_cast %125 : vector<3x8xf32> to vector<1x1x3x8xf32>
      tpu.vector_store %arg7[%c0_65, %c0_66, %c0_67, %c8_68], %128 {strides = array<i32>} : memref<1x1x3x64xf32, #tpu.memory_space<vmem>>, vector<1x1x3x8xf32>,
      %129 = arith.subf %124, %102 : vector<7x8xf32>
      %c0_69 = arith.constant 0 : index
      %c0_70 = arith.constant 0 : index
      %c0_71 = arith.constant 0 : index
      %c8_72 = arith.constant 8 : index
      %130 = vector.load %arg6[%c0_69, %c0_70, %c0_71, %c8_72] : memref<1x1x7x64xf32, #tpu.memory_space<vmem>>, vector<1x1x7x8xf32>
      %131 = vector.shape_cast %130 : vector<1x1x7x8xf32> to vector<7x8xf32>
      %132 = vector.shape_cast %129 : vector<7x8xf32> to vector<1x1x7x8xf32>
      tpu.vector_store %arg6[%c0_69, %c0_70, %c0_71, %c8_72], %132 {strides = array<i32>} : memref<1x1x7x64xf32, #tpu.memory_space<vmem>>, vector<1x1x7x8xf32>,
      %c0_73 = arith.constant 0 : index
      %c0_74 = arith.constant 0 : index
      %c0_75 = arith.constant 0 : index
      %c16 = arith.constant 16 : index
      %133 = vector.load %arg6[%c0_73, %c0_74, %c0_75, %c16] : memref<1x1x7x64xf32, #tpu.memory_space<vmem>>, vector<1x1x7x8xf32>
      %134 = vector.shape_cast %133 : vector<1x1x7x8xf32> to vector<7x8xf32>
      %cst_76 = arith.constant 2.000000e+00 : f32
      %135 = vector.broadcast %cst_76 : f32 to vector<1x8xf32>
      %136 = arith.cmpf ogt, %90, %135 : vector<1x8xf32>
      %137 = vector.shape_cast %136 : vector<1x8xi1> to vector<1x8xi1>
      %138 = vector.broadcast %137 : vector<1x8xi1> to vector<7x8xi1>
      %139 = arith.select %138, %134, %100 : vector<7x8xi1>, vector<7x8xf32>
      %140 = vector.extract_strided_slice %139 {offsets = [0, 0], sizes = [3, 8], strides = [1, 1]} : vector<7x8xf32> to vector<3x8xf32>
      %c0_77 = arith.constant 0 : index
      %c0_78 = arith.constant 0 : index
      %c0_79 = arith.constant 0 : index
      %c16_80 = arith.constant 16 : index
      %141 = vector.load %arg7[%c0_77, %c0_78, %c0_79, %c16_80] : memref<1x1x3x64xf32, #tpu.memory_space<vmem>>, vector<1x1x3x8xf32>
      %142 = vector.shape_cast %141 : vector<1x1x3x8xf32> to vector<3x8xf32>
      %143 = vector.shape_cast %140 : vector<3x8xf32> to vector<1x1x3x8xf32>
      tpu.vector_store %arg7[%c0_77, %c0_78, %c0_79, %c16_80], %143 {strides = array<i32>} : memref<1x1x3x64xf32, #tpu.memory_space<vmem>>, vector<1x1x3x8xf32>,
      %144 = arith.subf %139, %102 : vector<7x8xf32>
      %c0_81 = arith.constant 0 : index
      %c0_82 = arith.constant 0 : index
      %c0_83 = arith.constant 0 : index
      %c16_84 = arith.constant 16 : index
      %145 = vector.load %arg6[%c0_81, %c0_82, %c0_83, %c16_84] : memref<1x1x7x64xf32, #tpu.memory_space<vmem>>, vector<1x1x7x8xf32>
      %146 = vector.shape_cast %145 : vector<1x1x7x8xf32> to vector<7x8xf32>
      %147 = vector.shape_cast %144 : vector<7x8xf32> to vector<1x1x7x8xf32>
      tpu.vector_store %arg6[%c0_81, %c0_82, %c0_83, %c16_84], %147 {strides = array<i32>} : memref<1x1x7x64xf32, #tpu.memory_space<vmem>>, vector<1x1x7x8xf32>,
      %c0_85 = arith.constant 0 : index
      %c0_86 = arith.constant 0 : index
      %c0_87 = arith.constant 0 : index
      %c24 = arith.constant 24 : index
      %148 = vector.load %arg6[%c0_85, %c0_86, %c0_87, %c24] : memref<1x1x7x64xf32, #tpu.memory_space<vmem>>, vector<1x1x7x8xf32>
      %149 = vector.shape_cast %148 : vector<1x1x7x8xf32> to vector<7x8xf32>
      %cst_88 = arith.constant 3.000000e+00 : f32
      %150 = vector.broadcast %cst_88 : f32 to vector<1x8xf32>
      %151 = arith.cmpf ogt, %90, %150 : vector<1x8xf32>
      %152 = vector.shape_cast %151 : vector<1x8xi1> to vector<1x8xi1>
      %153 = vector.broadcast %152 : vector<1x8xi1> to vector<7x8xi1>
      %154 = arith.select %153, %149, %100 : vector<7x8xi1>, vector<7x8xf32>
      %155 = vector.extract_strided_slice %154 {offsets = [0, 0], sizes = [3, 8], strides = [1, 1]} : vector<7x8xf32> to vector<3x8xf32>
      %c0_89 = arith.constant 0 : index
      %c0_90 = arith.constant 0 : index
      %c0_91 = arith.constant 0 : index
      %c24_92 = arith.constant 24 : index
      %156 = vector.load %arg7[%c0_89, %c0_90, %c0_91, %c24_92] : memref<1x1x3x64xf32, #tpu.memory_space<vmem>>, vector<1x1x3x8xf32>
      %157 = vector.shape_cast %156 : vector<1x1x3x8xf32> to vector<3x8xf32>
      %158 = vector.shape_cast %155 : vector<3x8xf32> to vector<1x1x3x8xf32>
      tpu.vector_store %arg7[%c0_89, %c0_90, %c0_91, %c24_92], %158 {strides = array<i32>} : memref<1x1x3x64xf32, #tpu.memory_space<vmem>>, vector<1x1x3x8xf32>,
      %159 = arith.subf %154, %102 : vector<7x8xf32>
      %c0_93 = arith.constant 0 : index
      %c0_94 = arith.constant 0 : index
      %c0_95 = arith.constant 0 : index
      %c24_96 = arith.constant 24 : index
      %160 = vector.load %arg6[%c0_93, %c0_94, %c0_95, %c24_96] : memref<1x1x7x64xf32, #tpu.memory_space<vmem>>, vector<1x1x7x8xf32>
      %161 = vector.shape_cast %160 : vector<1x1x7x8xf32> to vector<7x8xf32>
      %162 = vector.shape_cast %159 : vector<7x8xf32> to vector<1x1x7x8xf32>
      tpu.vector_store %arg6[%c0_93, %c0_94, %c0_95, %c24_96], %162 {strides = array<i32>} : memref<1x1x7x64xf32, #tpu.memory_space<vmem>>, vector<1x1x7x8xf32>,
      %c0_97 = arith.constant 0 : index
      %c0_98 = arith.constant 0 : index
      %c0_99 = arith.constant 0 : index
      %c32 = arith.constant 32 : index
      %163 = vector.load %arg6[%c0_97, %c0_98, %c0_99, %c32] : memref<1x1x7x64xf32, #tpu.memory_space<vmem>>, vector<1x1x7x8xf32>
      %164 = vector.shape_cast %163 : vector<1x1x7x8xf32> to vector<7x8xf32>
      %cst_100 = arith.constant 4.000000e+00 : f32
      %165 = vector.broadcast %cst_100 : f32 to vector<1x8xf32>
      %166 = arith.cmpf ogt, %90, %165 : vector<1x8xf32>
      %167 = vector.shape_cast %166 : vector<1x8xi1> to vector<1x8xi1>
      %168 = vector.broadcast %167 : vector<1x8xi1> to vector<7x8xi1>
      %169 = arith.select %168, %164, %100 : vector<7x8xi1>, vector<7x8xf32>
      %170 = vector.extract_strided_slice %169 {offsets = [0, 0], sizes = [3, 8], strides = [1, 1]} : vector<7x8xf32> to vector<3x8xf32>
      %c0_101 = arith.constant 0 : index
      %c0_102 = arith.constant 0 : index
      %c0_103 = arith.constant 0 : index
      %c32_104 = arith.constant 32 : index
      %171 = vector.load %arg7[%c0_101, %c0_102, %c0_103, %c32_104] : memref<1x1x3x64xf32, #tpu.memory_space<vmem>>, vector<1x1x3x8xf32>
      %172 = vector.shape_cast %171 : vector<1x1x3x8xf32> to vector<3x8xf32>
      %173 = vector.shape_cast %170 : vector<3x8xf32> to vector<1x1x3x8xf32>
      tpu.vector_store %arg7[%c0_101, %c0_102, %c0_103, %c32_104], %173 {strides = array<i32>} : memref<1x1x3x64xf32, #tpu.memory_space<vmem>>, vector<1x1x3x8xf32>,
      %174 = arith.subf %169, %102 : vector<7x8xf32>
      %c0_105 = arith.constant 0 : index
      %c0_106 = arith.constant 0 : index
      %c0_107 = arith.constant 0 : index
      %c32_108 = arith.constant 32 : index
      %175 = vector.load %arg6[%c0_105, %c0_106, %c0_107, %c32_108] : memref<1x1x7x64xf32, #tpu.memory_space<vmem>>, vector<1x1x7x8xf32>
      %176 = vector.shape_cast %175 : vector<1x1x7x8xf32> to vector<7x8xf32>
      %177 = vector.shape_cast %174 : vector<7x8xf32> to vector<1x1x7x8xf32>
      tpu.vector_store %arg6[%c0_105, %c0_106, %c0_107, %c32_108], %177 {strides = array<i32>} : memref<1x1x7x64xf32, #tpu.memory_space<vmem>>, vector<1x1x7x8xf32>,
      %c0_109 = arith.constant 0 : index
      %c0_110 = arith.constant 0 : index
      %c0_111 = arith.constant 0 : index
      %c40 = arith.constant 40 : index
      %178 = vector.load %arg6[%c0_109, %c0_110, %c0_111, %c40] : memref<1x1x7x64xf32, #tpu.memory_space<vmem>>, vector<1x1x7x8xf32>
      %179 = vector.shape_cast %178 : vector<1x1x7x8xf32> to vector<7x8xf32>
      %cst_112 = arith.constant 5.000000e+00 : f32
      %180 = vector.broadcast %cst_112 : f32 to vector<1x8xf32>
      %181 = arith.cmpf ogt, %90, %180 : vector<1x8xf32>
      %182 = vector.shape_cast %181 : vector<1x8xi1> to vector<1x8xi1>
      %183 = vector.broadcast %182 : vector<1x8xi1> to vector<7x8xi1>
      %184 = arith.select %183, %179, %100 : vector<7x8xi1>, vector<7x8xf32>
      %185 = vector.extract_strided_slice %184 {offsets = [0, 0], sizes = [3, 8], strides = [1, 1]} : vector<7x8xf32> to vector<3x8xf32>
      %c0_113 = arith.constant 0 : index
      %c0_114 = arith.constant 0 : index
      %c0_115 = arith.constant 0 : index
      %c40_116 = arith.constant 40 : index
      %186 = vector.load %arg7[%c0_113, %c0_114, %c0_115, %c40_116] : memref<1x1x3x64xf32, #tpu.memory_space<vmem>>, vector<1x1x3x8xf32>
      %187 = vector.shape_cast %186 : vector<1x1x3x8xf32> to vector<3x8xf32>
      %188 = vector.shape_cast %185 : vector<3x8xf32> to vector<1x1x3x8xf32>
      tpu.vector_store %arg7[%c0_113, %c0_114, %c0_115, %c40_116], %188 {strides = array<i32>} : memref<1x1x3x64xf32, #tpu.memory_space<vmem>>, vector<1x1x3x8xf32>,
      %189 = arith.subf %184, %102 : vector<7x8xf32>
      %c0_117 = arith.constant 0 : index
      %c0_118 = arith.constant 0 : index
      %c0_119 = arith.constant 0 : index
      %c40_120 = arith.constant 40 : index
      %190 = vector.load %arg6[%c0_117, %c0_118, %c0_119, %c40_120] : memref<1x1x7x64xf32, #tpu.memory_space<vmem>>, vector<1x1x7x8xf32>
      %191 = vector.shape_cast %190 : vector<1x1x7x8xf32> to vector<7x8xf32>
      %192 = vector.shape_cast %189 : vector<7x8xf32> to vector<1x1x7x8xf32>
      tpu.vector_store %arg6[%c0_117, %c0_118, %c0_119, %c40_120], %192 {strides = array<i32>} : memref<1x1x7x64xf32, #tpu.memory_space<vmem>>, vector<1x1x7x8xf32>,
      %c0_121 = arith.constant 0 : index
      %c0_122 = arith.constant 0 : index
      %c0_123 = arith.constant 0 : index
      %c48 = arith.constant 48 : index
      %193 = vector.load %arg6[%c0_121, %c0_122, %c0_123, %c48] : memref<1x1x7x64xf32, #tpu.memory_space<vmem>>, vector<1x1x7x8xf32>
      %194 = vector.shape_cast %193 : vector<1x1x7x8xf32> to vector<7x8xf32>
      %cst_124 = arith.constant 6.000000e+00 : f32
      %195 = vector.broadcast %cst_124 : f32 to vector<1x8xf32>
      %196 = arith.cmpf ogt, %90, %195 : vector<1x8xf32>
      %197 = vector.shape_cast %196 : vector<1x8xi1> to vector<1x8xi1>
      %198 = vector.broadcast %197 : vector<1x8xi1> to vector<7x8xi1>
      %199 = arith.select %198, %194, %100 : vector<7x8xi1>, vector<7x8xf32>
      %200 = vector.extract_strided_slice %199 {offsets = [0, 0], sizes = [3, 8], strides = [1, 1]} : vector<7x8xf32> to vector<3x8xf32>
      %c0_125 = arith.constant 0 : index
      %c0_126 = arith.constant 0 : index
      %c0_127 = arith.constant 0 : index
      %c48_128 = arith.constant 48 : index
      %201 = vector.load %arg7[%c0_125, %c0_126, %c0_127, %c48_128] : memref<1x1x3x64xf32, #tpu.memory_space<vmem>>, vector<1x1x3x8xf32>
      %202 = vector.shape_cast %201 : vector<1x1x3x8xf32> to vector<3x8xf32>
      %203 = vector.shape_cast %200 : vector<3x8xf32> to vector<1x1x3x8xf32>
      tpu.vector_store %arg7[%c0_125, %c0_126, %c0_127, %c48_128], %203 {strides = array<i32>} : memref<1x1x3x64xf32, #tpu.memory_space<vmem>>, vector<1x1x3x8xf32>,
      %204 = arith.subf %199, %102 : vector<7x8xf32>
      %c0_129 = arith.constant 0 : index
      %c0_130 = arith.constant 0 : index
      %c0_131 = arith.constant 0 : index
      %c48_132 = arith.constant 48 : index
      %205 = vector.load %arg6[%c0_129, %c0_130, %c0_131, %c48_132] : memref<1x1x7x64xf32, #tpu.memory_space<vmem>>, vector<1x1x7x8xf32>
      %206 = vector.shape_cast %205 : vector<1x1x7x8xf32> to vector<7x8xf32>
      %207 = vector.shape_cast %204 : vector<7x8xf32> to vector<1x1x7x8xf32>
      tpu.vector_store %arg6[%c0_129, %c0_130, %c0_131, %c48_132], %207 {strides = array<i32>} : memref<1x1x7x64xf32, #tpu.memory_space<vmem>>, vector<1x1x7x8xf32>,
      %c0_133 = arith.constant 0 : index
      %c0_134 = arith.constant 0 : index
      %c0_135 = arith.constant 0 : index
      %c56 = arith.constant 56 : index
      %208 = vector.load %arg6[%c0_133, %c0_134, %c0_135, %c56] : memref<1x1x7x64xf32, #tpu.memory_space<vmem>>, vector<1x1x7x8xf32>
      %209 = vector.shape_cast %208 : vector<1x1x7x8xf32> to vector<7x8xf32>
      %cst_136 = arith.constant 7.000000e+00 : f32
      %210 = vector.broadcast %cst_136 : f32 to vector<1x8xf32>
      %211 = arith.cmpf ogt, %90, %210 : vector<1x8xf32>
      %212 = vector.shape_cast %211 : vector<1x8xi1> to vector<1x8xi1>
      %213 = vector.broadcast %212 : vector<1x8xi1> to vector<7x8xi1>
      %214 = arith.select %213, %209, %100 : vector<7x8xi1>, vector<7x8xf32>
      %215 = vector.extract_strided_slice %214 {offsets = [0, 0], sizes = [3, 8], strides = [1, 1]} : vector<7x8xf32> to vector<3x8xf32>
      %c0_137 = arith.constant 0 : index
      %c0_138 = arith.constant 0 : index
      %c0_139 = arith.constant 0 : index
      %c56_140 = arith.constant 56 : index
      %216 = vector.load %arg7[%c0_137, %c0_138, %c0_139, %c56_140] : memref<1x1x3x64xf32, #tpu.memory_space<vmem>>, vector<1x1x3x8xf32>
      %217 = vector.shape_cast %216 : vector<1x1x3x8xf32> to vector<3x8xf32>
      %218 = vector.shape_cast %215 : vector<3x8xf32> to vector<1x1x3x8xf32>
      tpu.vector_store %arg7[%c0_137, %c0_138, %c0_139, %c56_140], %218 {strides = array<i32>} : memref<1x1x3x64xf32, #tpu.memory_space<vmem>>, vector<1x1x3x8xf32>,
      %219 = arith.subf %214, %102 : vector<7x8xf32>
      %c0_141 = arith.constant 0 : index
      %c0_142 = arith.constant 0 : index
      %c0_143 = arith.constant 0 : index
      %c56_144 = arith.constant 56 : index
      %220 = vector.load %arg6[%c0_141, %c0_142, %c0_143, %c56_144] : memref<1x1x7x64xf32, #tpu.memory_space<vmem>>, vector<1x1x7x8xf32>
      %221 = vector.shape_cast %220 : vector<1x1x7x8xf32> to vector<7x8xf32>
      %222 = vector.shape_cast %219 : vector<7x8xf32> to vector<1x1x7x8xf32>
      tpu.vector_store %arg6[%c0_141, %c0_142, %c0_143, %c56_144], %222 {strides = array<i32>} : memref<1x1x7x64xf32, #tpu.memory_space<vmem>>, vector<1x1x7x8xf32>,
    } else {
    }
    return
  }
  func.func @transform_0(%arg0: i32, %arg1: i32, %arg2: i32) -> (i32, i32, i32) {
    %c0_i32 = arith.constant 0 : i32
    %c0_i32_0 = arith.constant 0 : i32
    return %arg0, %c0_i32, %arg1 : i32, i32, i32
  }
  func.func @transform_1(%arg0: i32, %arg1: i32, %arg2: i32) -> (i32, i32, i32) {
    %c0_i32 = arith.constant 0 : i32
    %c0_i32_0 = arith.constant 0 : i32
    return %arg0, %arg2, %c0_i32 : i32, i32, i32
  }
  func.func @transform_2(%arg0: i32, %arg1: i32, %arg2: i32) -> (i32, i32, i32) {
    %c0_i32 = arith.constant 0 : i32
    %c0_i32_0 = arith.constant 0 : i32
    return %arg0, %c0_i32, %arg2 : i32, i32, i32
  }
  func.func @transform_3(%arg0: i32, %arg1: i32, %arg2: i32) -> (i32, i32, i32, i32) {
    %c0_i32 = arith.constant 0 : i32
    %c0_i32_0 = arith.constant 0 : i32
    %c0_i32_1 = arith.constant 0 : i32
    return %arg0, %arg1, %c0_i32, %c0_i32_0 : i32, i32, i32, i32
  }
  func.func @transform_4(%arg0: i32, %arg1: i32, %arg2: i32) -> (i32, i32, i32, i32) {
    %c0_i32 = arith.constant 0 : i32
    %c0_i32_0 = arith.constant 0 : i32
    %c0_i32_1 = arith.constant 0 : i32
    return %arg0, %arg1, %c0_i32, %c0_i32_0 : i32, i32, i32, i32
  }
}

</mosaic_0001>

<bundles_post_ra>
// kernel: tpu_custom_call.1
= control target key start
LH: loop header
LB: loop body
LE: loop exit
PB: predicated region body
PF: predicated region fallthrough
CT: control target
= control target key end

     0   :  { %s1356_s15 = smov 0   ;;  %s1358_s16 = smov 0   ;;  %s1632_s0 = inlined_call_operand.vmem [shape: f32[2,3,8], index: 0, kind: input, shape index: {}]   ;;  %s1633_s1 = inlined_call_operand.vmem [shape: f32[2,16,3], index: 1, kind: input, shape index: {}]   ;;  %s1634_s2 = inlined_call_operand.vmem [shape: f32[2,7,16], index: 2, kind: input, shape index: {}]   ;;  %s1635_s3 = inlined_call_operand.vmem [shape: f32[2,1,7,64], index: 3, kind: output, shape index: {0}]   ;;  %s1636_s4 = inlined_call_operand.vmem [shape: f32[2,1,3,64], index: 4, kind: output, shape index: {1}]  }
   0x1   :  { %s1360_s17 = smov 0  }
   0x2 LB: > { %s34_s18 = sadd.s32 1, %s1306_s16  ;;  %p1134_p0 = scmp.ge.s32.totalorder %s1310_s17, 1  ;;  %s1310_s17 = sphi %s1360_s17, %s15_s17   ;;  %s1306_s16 = sphi %s1358_s16, %s1642_s16   ;;  %s1302_s15 = sphi %s1356_s15, %s1641_s15  }
   0x3   : > { %p36_p1 = scmp.ge.s32.totalorder %s34_s18, 2  ;;  %p223_p2 = scmp.lt.s32.totalorder %s1310_s17, 3 }
   0x5   : > { %s1644_s18 = smov (%p36_p1, %s34_s18), 0  ;;  %p224_p3 = pnand %p1134_p0, %p223_p2 }
   0x6   : > { %p276_p4 = scmp.lt.s32.totalorder (!%p224_p3), %s1302_s15, 1  ;;  %vm353_vm0 = vcmask (!%p224_p3), 1042432   ;;  %vm340_vm1 = vcmask (!%p224_p3), 23552   ;;  %v444_v8 = vlaneseq (!%p224_p3)  ;;  %vm462_vm3 = vcmask (!%p224_p3), 130048   ;;  %s1315_s27 = smov (!%p224_p3), 24  }
   0x7   : > { %227 = sbr.rel (%p224_p3) target bundleno = 2521 (0x9d9), region = 32  ;;  %v1312_v12 = vmov (!%p224_p3), 0.0   ;;  %vm320_vm5 = vcmask (!%p224_p3), 57344   ;;  %v1313_v14 = vmov (!%p224_p3), 0   ;;  %vm330_vm6 = vcmask (!%p224_p3), 59392   ;;  %s1316_s28 = smov (!%p224_p3), 8  }
   0x8   : > { %v445_v9 = vshrl.u32 (!%p224_p3), %v444_v8, 7  ;;  %v448_v10 = vand.u32 (!%p224_p3), 127, %v444_v8  ;;  %321 = vst.msk [vmem:[#allocation2] sm:$0x1] (!%p224_p3), %vm320_vm5, %v1312_v12  ;;  %1286 = vset.pattern.permute.xlu1 (!%p224_p3), %v1313_v14  ;;  %1287 = vset.pattern.permute.xlu0 (!%p224_p3), %v1313_v14  ;;  %vm544_vm7 = vcmask (!%p224_p3), 64512   ;;  %s1317_s29 = smov (!%p224_p3), 16  }
   0x9   : > { %v1314_v38 = vmov (!%p224_p3), 1.0|1.0   ;;  %s1318_s30 = smov (!%p224_p3), 32   ;;  %s1320_s5 = smov (!%p224_p3), 40  }
   0xa   : > { %v446_v11 = vadd.s32 (!%p224_p3), 8, %v445_v9  ;;  %vm449_vm2 = vcmp.le.s32.totalorder (!%p224_p3), %v448_v10, %v445_v9  ;;  %v1419_v50 = vsub.s32 (!%p224_p3), 0, %v445_v9  ;;  %s1322_s13 = smov (!%p224_p3), 48   ;;  %s1323_s14 = smov (!%p224_p3), 56  }
   0xb   : > { %v1146_v13 = vsel (!%p224_p3), %vm449_vm2, 1.0, %v1312_v12  ;;  %s1327_s24 = smov (!%p224_p3), 96   ;;  %s1328_s25 = smov (!%p224_p3), 88  }
   0xc   : > { %vm450_vm4 = vcmp.le.s32.totalorder (!%p224_p3), %v448_v10, %v446_v11  ;;  %1191 = vmatprep.mubr.msk.f32.mxu1 (!%p224_p3), %vm462_vm3, %v1146_v13 }
   0xd   : > { %v1147_v40 = vsel (!%p224_p3), %vm450_vm4, 1.0, %v1312_v12 }
   0xe   : > { %s1646_s15 = smov (!%p276_p4, %s1302_s15), 1 }
   0xf   : > { %s1135_s19 = sshll.u32 %s1646_s15, 2  ;;  %s1171_s20 = sshll.u32 %s1646_s15, 4  ;;  %v455_v47 = vld [vmem:[#allocation2] sm:$0x1] }
  0x10   : > { %s282_s23 = scalar_lea.vmem %s1632_s0, %s1135_s19  ;;  %s291_s26 = scalar_lea.vmem %s1633_s1, %s1171_s20  ;;  %v460_v51 = vrot.slane %v455_v47, %v1419_v50 }
  0x11   : > { %v325_v0 = vld [vmem:[%s282_s23] sm:$0x7]  ;;  %v327_v3 = vld [vmem:[%s291_s26 + $0x8] sm:$0xff]  ;;  %s1138_s6 = sshll.u32 %s1646_s15, 3  ;;  %s1534_s22 = scalar_lea.vmem %s1636_s4, %s1135_s19 }
  0x12   : > { %1182 = vmatprep.subr.msk.mxu0 %vm353_vm0, %v325_v0  ;;  %v1386_v1 = vsel %vm353_vm0, %v325_v0, 0.0  ;;  %v326_v2 = vld [vmem:[%s291_s26] sm:$0xff]  ;;  %v339_v5 = vmul.f32 %v327_v3, %v327_v3  ;;  %v329_v15 = vmul.f32 %v325_v0, %v325_v0  ;;  %s1492_s9 = scalar_lea.vmem %s1634_s2, %s1138_s6  ;;  %s1497_s12 = scalar_lea.vmem %s1635_s3, %s1138_s6 }
  0x13   : > { %1183 = vmatpush3.msk.msra.mxu0 %vm353_vm0, %v325_v0  ;;  %v338_v4 = vmul.f32 %v326_v2, %v326_v2  ;;  %1184 = vmatprep.mubr.msk.f32.mxu0 %vm340_vm1, %v326_v2  ;;  %s1324_s15 = smov 120   ;;  %s1325_s19 = smov 112  }
  0x14   : > { %1185 = vmatmul.mubr.msk.f32.vlgmr.msra.gmra.mrb[0].mxu0 %vm340_vm1, %v327_v3  ;;  %v344_v7 = vsel %vm340_vm1, %v339_v5, 0.0  ;;  %v331_v16 = vsel %vm330_vm6, %v329_v15, 0.0  ;;  %s1326_s23 = smov 104   ;;  %s1329_s26 = smov 80  }
  0x15   : > { %v341_v6 = vsel %vm340_vm1, %v338_v4, 0.0  ;;  %v332_v17 = vrot.slane %v331_v16, 4  ;;  %s1330_s6 = smov 72  }
  0x16   : > { %342 = vadd.xlane.f32.xlu0 %v341_v6 }
  0x17   : > { %v333_v18 = vadd.f32 %v332_v17, %v331_v16  ;;  %v1319_v16 = vmov 0.0|0.0   ;;  %v322_v17 = vld [vmem:[%s1492_s9] sm:$0x7f] }
  0x18   : > { %1205 = vmatprep.subr.bf16.mxu0 %v1319_v16 }
  0x19   : > { %v334_v19 = vrot.slane %v333_v18, 2 }
  0x1a   : > { %345 = vadd.xlane.f32.xlu0 %v344_v7 }
  0x1b   : > { %v335_v20 = vadd.f32 %v334_v19, %v333_v18 }
  0x1d   : > { %v336_v22 = vrot.slane %v335_v20, 1 }
  0x1f   : > { %v337_v24 = vadd.f32 %v336_v22, %v335_v20 }
  0xa3   : > { %v343_v21 = vpop.xlane.xlu0 %342 }
  0xa4   : > { %v432_v29 = vadd.f32 %v343_v21, %v337_v24 }
  0xa7   : > { %v346_v23 = vpop.xlane.xlu0 %345 }
  0xa8   : > { %v433_v25 = vadd.f32 %v346_v23, %v337_v24 }
  0xe7   : > { %v1186_v26 = vpop.f32.mrb[0].mxu0 }
  0xe8   : > { %v435_v27 = vmul.f32 2.0, %v1186_v26  ;;  %v423_v28 = vpop.f32.mrb[1].mxu0 }
  0xe9   : > { %v434_v30 = vmul.f32 2.0, %v423_v28 }
  0xea   : > { %v437_v31 = vsub.f32 %v433_v25, %v435_v27 }
  0xeb   : > { %v436_v32 = vsub.f32 %v432_v29, %v434_v30 }
  0xec   : > { %vm1395_vm8 = vcmp.lt.f32.partialorder %v437_v31, 0.36 }
  0xed   : > { %vm1399_vm9 = vcmp.lt.f32.partialorder %v436_v32, 0.36  ;;  %v1145_v35 = vsel %vm1395_vm8, 1.0, %v1312_v12 }
  0xee   : > { %vm1201_vm10 = vmpackc.low %vm1395_vm8, %vm1399_vm9  ;;  %v1144_v36 = vsel %vm1399_vm9, 1.0, %v1312_v12  ;;  %v546_v37 = vsel %vm544_vm7, %v1145_v35, 0.0 }
  0xef   : > { %1202 = vmatprep.subr.msk.bf16.mxu1 %vm1201_vm10, %v1314_v38  ;;  %v545_v39 = vsel %vm544_vm7, %v1144_v36, 0.0 }
  0xf0   : > { %1204 = vmatpush3.bf16.msk.msra.mxu1 %vm1201_vm10, %v1314_v38  ;;  %v547_v41 = vadd.f32 %v546_v37, %v545_v39 }
  0xf2   : > { %v548_v42 = vrot.slane %v547_v41, 4 }
  0xf3   : > { %1192 = vmatmul.mubr.msk.f32.vlgmr.msra.gmra.mrb[0].mxu1 %vm462_vm3, %v1147_v40 }
  0xf4   : > { %v549_v43 = vadd.f32 %v548_v42, %v547_v41 }
  0xf6   : > { %v550_v44 = vrot.slane %v549_v43, 2 }
  0xf8   : > { %v551_v45 = vadd.f32 %v550_v44, %v549_v43 }
  0xfa   : > { %v552_v46 = vrot.slane %v551_v45, 1 }
  0xfc   : > { %v553_v48 = vadd.f32 %v552_v46, %v551_v45 }
  0xfe   : > { %v554_v49 = vadd.f32 %v553_v48, %v455_v47 }
 0x100   : > { %556 = vst.msk [vmem:[#allocation2] sm:$0x1] %vm320_vm5, %v554_v49 }
 0x1c6   : > { %v1193_v52 = vpop.f32.mrb[0].mxu1 }
 0x1c7   : > { %v1422_v53 = vadd.f32 %v1193_v52, %v460_v51  ;;  %v535_v54 = vpop.f32.mrb[1].mxu1 }
 0x1c8   : > { %v1424_v55 = vadd.f32 %v535_v54, %v460_v51 }
 0x1c9   : > { %vm582_vm11 = vcmp.eq.f32.partialorder %v1422_v53, 4.0  ;;  %vm566_vm15 = vcmp.eq.f32.partialorder %v1422_v53, 2.0  ;;  %vm574_vm4 = vcmp.eq.f32.partialorder %v1422_v53, 3.0 }
 0x1ca   : > { %vm581_vm12 = vcmp.eq.f32.partialorder %v1424_v55, 4.0  ;;  %vm584_vm13 = vmand %vm1395_vm8, %vm582_vm11  ;;  %vm565_vm14 = vcmp.eq.f32.partialorder %v1424_v55, 2.0  ;;  %vm573_vm1 = vcmp.eq.f32.partialorder %v1424_v55, 3.0  ;;  %vm589_vm10 = vcmp.eq.f32.partialorder %v1424_v55, 5.0 }
 0x1cb   : > { %vm583_vm0 = vmand %vm1399_vm9, %vm581_vm12  ;;  %v1159_v56 = vsel %vm584_vm13, 1.0, %v1312_v12  ;;  %vm590_vm12 = vcmp.eq.f32.partialorder %v1422_v53, 5.0 }
 0x1cc   : > { %v1158_v57 = vsel %vm583_vm0, 1.0, %v1312_v12  ;;  %vm567_vm2 = vmand %vm1399_vm9, %vm565_vm14  ;;  %vm597_vm14 = vcmp.eq.f32.partialorder %v1424_v55, 6.0  ;;  %vm598_vm0 = vcmp.eq.f32.partialorder %v1422_v53, 6.0 }
 0x1cd   : > { %v1261_v58 = vpack.i.bf16 %v1159_v56, %v1158_v57  ;;  %vm568_vm5 = vmand %vm1395_vm8, %vm566_vm15  ;;  %v1154_v59 = vsel %vm567_vm2, 1.0, %v1312_v12  ;;  %vm605_vm2 = vcmp.eq.f32.partialorder %v1424_v55, 7.0  ;;  %v328_v57 = vld [vmem:[%s1492_s9] sm:$0x7f] }
 0x1ce   : > { %v1155_v60 = vsel %vm568_vm5, 1.0, %v1312_v12  ;;  %vm575_vm11 = vmand %vm1399_vm9, %vm573_vm1  ;;  %vm606_vm5 = vcmp.eq.f32.partialorder %v1422_v53, 7.0 }
 0x1cf   : > { %1262 = vrot.lane.b32.xlu0 %v1261_v58, %s1315_s27  ;;  %v1251_v61 = vpack.i.bf16 %v1155_v60, %v1154_v59  ;;  %vm576_vm13 = vmand %vm1395_vm8, %vm574_vm4  ;;  %v1156_v62 = vsel %vm575_vm11, 1.0, %v1312_v12  ;;  %vm613_vm11 = vcmp.eq.f32.partialorder %v1424_v55, 8.0  ;;  %v1521_v58 = vld [vmem:[#allocation2] sm:$0x1] }
 0x1d0   : > { %v1157_v63 = vsel %vm576_vm13, 1.0, %v1312_v12  ;;  %vm591_vm15 = vmand %vm1399_vm9, %vm589_vm10  ;;  %vm614_vm13 = vcmp.eq.f32.partialorder %v1422_v53, 8.0 }
 0x1d1   : > { %1252 = vrot.lane.b32.xlu1 %v1251_v61, %s1316_s28  ;;  %v1256_v0 = vpack.i.bf16 %v1157_v63, %v1156_v62  ;;  %vm592_vm1 = vmand %vm1395_vm8, %vm590_vm12  ;;  %v1160_v2 = vsel %vm591_vm15, 1.0, %v1312_v12 }
 0x1d2   : > { %v1161_v3 = vsel %vm592_vm1, 1.0, %v1312_v12  ;;  %vm599_vm4 = vmand %vm1399_vm9, %vm597_vm14  ;;  %vm323_vm1 = vcmask 6144  }
 0x1d3   : > { %v1266_v4 = vpack.i.bf16 %v1161_v3, %v1160_v2  ;;  %vm600_vm10 = vmand %vm1395_vm8, %vm598_vm0  ;;  %v1162_v5 = vsel %vm599_vm4, 1.0, %v1312_v12  ;;  %324 = vst.msk [vmem:[#allocation3] sm:$0x7f] %vm323_vm1, %v322_v17  ;;  %vm318_vm4 = vcmask 522240   ;;  %vm798_vm1 = vcmp.gt.f32.partialorder %v1521_v58, 1.0 }
 0x1d4   : > { %v1163_v6 = vsel %vm600_vm10, 1.0, %v1312_v12  ;;  %vm607_vm12 = vmand %vm1399_vm9, %vm605_vm2  ;;  %vm1321_vm2 = vmmov 0   ;;  %319 = vst.msk [vmem:[%s1497_s12] sm:$0x7f] %vm318_vm4, %v1312_v12  ;;  %vm557_vm10 = vcmp.eq.f32.partialorder %v1424_v55, 1.0 }
 0x1d5   : > { %1257 = vrot.lane.b32.xlu1 %v1256_v0, %s1317_s29  ;;  %v1271_v7 = vpack.i.bf16 %v1163_v6, %v1162_v5  ;;  %vm608_vm14 = vmand %vm1395_vm8, %vm606_vm5  ;;  %v1164_v8 = vsel %vm607_vm12, 1.0, %v1312_v12  ;;  %1198 = vmatprep.mubr.msk.f32.mxu0 %vm1321_vm2, %v1312_v12  ;;  %vm558_vm5 = vcmp.eq.f32.partialorder %v1422_v53, 1.0 }
 0x1d6   : > { %v1165_v9 = vsel %vm608_vm14, 1.0, %v1312_v12  ;;  %vm615_vm15 = vmand %vm1399_vm9, %vm613_vm11  ;;  %vm684_vm14 = vcmask 261120  }
 0x1d7   : > { %v1276_v10 = vpack.i.bf16 %v1165_v9, %v1164_v8  ;;  %vm616_vm0 = vmand %vm1395_vm8, %vm614_vm13  ;;  %v1166_v11 = vsel %vm615_vm15, 1.0, %v1312_v12  ;;  %vm681_vm13 = vcmask 195584   ;;  %vm784_vm15 = vcmp.gt.f32.partialorder %v1521_v58, 0.0 }
 0x1d8   : > { %v1167_v13 = vsel %vm616_vm0, 1.0, %v1312_v12  ;;  %vm560_vm11 = vmand %vm1395_vm8, %vm558_vm5  ;;  %vm687_vm8 = vcmask 326656   ;;  %v785_v63 = vsel %vm784_vm15, 1, %v1313_v14  ;;  %vm795_vm0 = vcmask 63488  }
 0x1d9   : > { %1267 = vrot.lane.b32.xlu1 %v1266_v4, %s1318_s30  ;;  %v1281_v15 = vpack.i.bf16 %v1167_v13, %v1166_v11  ;;  %vm559_vm12 = vmand %vm1399_vm9, %vm557_vm10  ;;  %v1153_v28 = vsel %vm560_vm11, 1.0, %v1312_v12  ;;  %vm693_vm9 = vcmask 457728   ;;  %v789_v0 = vrot.slane %v785_v63, %v1419_v50 }
 0x1da   : > { %v778_v18 = vld [vmem:[#allocation3] sm:$0x7f]  ;;  %v1152_v29 = vsel %vm559_vm12, 1.0, %v1312_v12  ;;  %vm847_vm10 = vcmask 194688   ;;  %vm850_vm11 = vcmp.gt.f32.partialorder %v1521_v58, 3.0 }
 0x1db   : > { %v769_v59 = vld [vmem:[%s1497_s12] sm:$0x7f] }
 0x1dd   : > { %1272 = vrot.lane.b32.xlu1 %v1271_v7, %s1320_s5  ;;  %v799_v7 = vsel %vm798_vm1, 1, %v1313_v14 }
 0x1de   : > { %v803_v8 = vrot.slane %v799_v7, %v1419_v50 }
 0x1e0   : > { %vm804_vm2 = vcmp.eq.s32.totalorder %v803_v8, 1 }
 0x1e1   : > { %1277 = vrot.lane.b32.xlu1 %v1276_v10, %s1322_s13 }
 0x1e5   : > { %1282 = vrot.lane.b32.xlu1 %v1281_v15, %s1323_s14 }
 0x1e9   : > { %781 = vperm.xlu1 %1286, %v778_v18  }
 0x241   : > { %v1263_v27 = vpop.permute.xlu0 %1262 }
 0x242   : > { %v1265_v37 = vunpack.i.h.bf16 %v1263_v27  ;;  %v1264_v38 = vunpack.i.l.bf16 %v1263_v27 }
 0x243   : > { %v1253_v19 = vpop.permute.xlu1 %1252 }
 0x244   : > { %v1255_v22 = vunpack.i.h.bf16 %v1253_v19  ;;  %v1254_v23 = vunpack.i.l.bf16 %v1253_v19 }
 0x246   : > { %v678_v30 = vsel %vm544_vm7, %v1153_v28, %v1255_v22  ;;  %v677_v31 = vsel %vm544_vm7, %v1152_v29, %v1254_v23  ;;  %vm690_vm7 = vcmask 392192   ;;  %v851_v23 = vsel %vm850_vm11, 1, %v1313_v14 }
 0x247   : > { %v1258_v20 = vpop.permute.xlu1 %1257  ;;  %vm866_vm11 = vcmask 256192  }
 0x248   : > { %v1260_v24 = vunpack.i.h.bf16 %v1258_v20  ;;  %v1259_v25 = vunpack.i.l.bf16 %v1258_v20 }
 0x24a   : > { %v679_v32 = vsel %vm462_vm3, %v677_v31, %v1259_v25  ;;  %v680_v33 = vsel %vm462_vm3, %v678_v30, %v1260_v24  ;;  %v855_v24 = vrot.slane %v851_v23, %v1419_v50 }
 0x24b   : > { %v1268_v21 = vpop.permute.xlu1 %1267  ;;  %v682_v42 = vsel %vm681_vm13, %v679_v32, %v1264_v38  ;;  %v683_v43 = vsel %vm681_vm13, %v680_v33, %v1265_v37  ;;  %vm873_vm13 = vcmask 260288  }
 0x24c   : > { %v1270_v34 = vunpack.i.h.bf16 %v1268_v21  ;;  %v1269_v35 = vunpack.i.l.bf16 %v1268_v21  ;;  %vm856_vm12 = vcmp.eq.s32.totalorder %v855_v24, 1 }
 0x24e   : > { %v685_v44 = vsel %vm684_vm14, %v682_v42, %v1269_v35  ;;  %v686_v45 = vsel %vm684_vm14, %v683_v43, %v1270_v34  ;;  %vm876_vm14 = vcmp.gt.f32.partialorder %v1521_v58, 4.0 }
 0x24f   : > { %v1273_v26 = vpop.permute.xlu1 %1272  ;;  %v877_v30 = vsel %vm876_vm14, 1, %v1313_v14  ;;  %vm944_vm14 = vcmask 452992  }
 0x250   : > { %v1275_v39 = vunpack.i.h.bf16 %v1273_v26  ;;  %v1274_v40 = vunpack.i.l.bf16 %v1273_v26  ;;  %v881_v31 = vrot.slane %v877_v30, %v1419_v50 }
 0x252   : > { %v688_v47 = vsel %vm687_vm8, %v685_v44, %v1274_v40  ;;  %v689_v48 = vsel %vm687_vm8, %v686_v45, %v1275_v39  ;;  %vm882_vm8 = vcmp.eq.s32.totalorder %v881_v31, 1 }
 0x253   : > { %v1278_v36 = vpop.permute.xlu1 %1277 }
 0x254   : > { %v1280_v41 = vunpack.i.h.bf16 %v1278_v36  ;;  %v1279_v12 = vunpack.i.l.bf16 %v1278_v36 }
 0x256   : > { %v691_v52 = vsel %vm690_vm7, %v688_v47, %v1279_v12  ;;  %v692_v53 = vsel %vm690_vm7, %v689_v48, %v1280_v41  ;;  %vm899_vm7 = vcmask 325888  }
 0x257   : > { %v1283_v46 = vpop.permute.xlu1 %1282 }
 0x258   : > { %v1285_v49 = vunpack.i.h.bf16 %v1283_v46  ;;  %v1284_v51 = vunpack.i.l.bf16 %v1283_v46 }
 0x25a   : > { %v694_v54 = vsel %vm693_vm9, %v691_v52, %v1284_v51  ;;  %v695_v55 = vsel %vm693_vm9, %v692_v53, %v1285_v49  ;;  %vm902_vm9 = vcmp.gt.f32.partialorder %v1521_v58, 5.0 }
 0x25b   : > { %v1206_v56 = vpack.c.bf16 %v695_v55, %v694_v54  ;;  %v903_v37 = vsel %vm902_vm9, 1, %v1313_v14 }
 0x25c   : > { %v907_v38 = vrot.slane %v903_v37, %v1419_v50 }
 0x25d   : > { %1207 = vmatpush3.bf16.msra.mxu0 %v1206_v56 }
 0x25e   : > { %vm908_vm15 = vcmp.eq.s32.totalorder %v907_v38, 1 }
 0x260   : > { %1199 = vmatmul.mubr.msk.f32.vlgmr.msra.gmra.mrb[2].mxu0 %vm462_vm3, %v328_v57  ;;  %vm790_vm3 = vcmp.eq.s32.totalorder %v789_v0, 1 }
 0x268   : > { %v782_v2 = vpop.permute.xlu1 %781 }
 0x333   : > { %v765_v60 = vpop.f32.mrb[2].mxu0 }
 0x334   : > { %v770_v61 = vadd.f32 %v769_v59, %v765_v60  ;;  %v1200_v62 = vpop.f32.mrb[3].mxu0 }
 0x336   : > { %772 = vst.msk [vmem:[%s1497_s12] sm:$0x7f] %vm318_vm4, %v770_v61  ;;  %vm824_vm4 = vcmp.gt.f32.partialorder %v1521_v58, 2.0 }
 0x337   : > { %v825_v16 = vsel %vm824_vm4, 1, %v1313_v14  ;;  %vm954_vm4 = vcmp.gt.f32.partialorder %v1521_v58, 7.0 }
 0x338   : > { %v829_v17 = vrot.slane %v825_v16, %v1419_v50  ;;  %v955_v52 = vsel %vm954_vm4, 1, %v1313_v14 }
 0x339   : > { %v959_v53 = vrot.slane %v955_v52, %v1419_v50 }
 0x33a   : > { %vm830_vm5 = vcmp.eq.s32.totalorder %v829_v17, 1 }
 0x33d   : > { %v777_v3 = vld [vmem:[%s1497_s12] sm:$0x7f] }
 0x33e   : > { %v1537_v4 = vsel %vm790_vm3, %v777_v3, %v782_v2  ;;  %vm925_vm3 = vcmask 391488  }
 0x33f   : > { %v794_v5 = vsub.f32 %v1537_v4, %v1386_v1  ;;  %793 = vst.msk [vmem:[%s1534_s22] sm:$0x7] %vm330_vm6, %v1537_v4  ;;  %vm821_vm6 = vcmask 129088  }
 0x341   : > { %796 = vst.msk [vmem:[%s1497_s12] sm:$0x7f] %vm795_vm0, %v794_v5  ;;  %vm928_vm0 = vcmp.gt.f32.partialorder %v1521_v58, 6.0 }
 0x342   : > { %v929_v43 = vsel %vm928_vm0, 1, %v1313_v14 }
 0x343   : > { %v933_v44 = vrot.slane %v929_v43, %v1419_v50 }
 0x345   : > { %vm934_vm1 = vcmp.eq.s32.totalorder %v933_v44, 1 }
 0x348   : > { %v797_v6 = vld [vmem:[%s1497_s12] sm:$0x7f] }
 0x349   : > { %806 = vrot.lane.b32.xlu1 %v797_v6, %s1324_s15 }
 0x3bb   : > { %v807_v9 = vpop.permute.xlu1 %806 }
 0x3bc   : > { %v1550_v10 = vsel %vm804_vm2, %v807_v9, %v1537_v4  ;;  %vm951_vm2 = vcmask 457088  }
 0x3bd   : > { %v816_v11 = vsub.f32 %v1550_v10, %v1386_v1 }
 0x3bf   : > { %818 = vrot.lane.b32.xlu0 %v816_v11, %s1316_s28 }
 0x431   : > { %v819_v13 = vpop.permute.xlu0 %818 }
 0x432   : > { %822 = vst.msk [vmem:[%s1497_s12] sm:$0x7f] %vm821_vm6, %v819_v13  ;;  %vm814_vm6 = vcmask 124992  }
 0x439   : > { %v823_v15 = vld [vmem:[%s1497_s12] sm:$0x7f] }
 0x43a   : > { %832 = vrot.lane.b32.xlu1 %v823_v15, %s1325_s19 }
 0x4ac   : > { %v833_v18 = vpop.permute.xlu1 %832 }
 0x4ad   : > { %v1561_v19 = vsel %vm830_vm5, %v833_v18, %v1537_v4  ;;  %vm960_vm5 = vcmp.eq.s32.totalorder %v959_v53, 1 }
 0x4ae   : > { %v842_v20 = vsub.f32 %v1561_v19, %v1386_v1 }
 0x4b0   : > { %844 = vrot.lane.b32.xlu0 %v842_v20, %s1317_s29 }
 0x522   : > { %v845_v21 = vpop.permute.xlu0 %844 }
 0x523   : > { %848 = vst.msk [vmem:[%s1497_s12] sm:$0x7f] %vm847_vm10, %v845_v21  ;;  %vm840_vm10 = vcmask 190592  }
 0x52a   : > { %v849_v22 = vld [vmem:[%s1497_s12] sm:$0x7f] }
 0x52b   : > { %858 = vrot.lane.b32.xlu1 %v849_v22, %s1326_s23 }
 0x59d   : > { %v859_v25 = vpop.permute.xlu1 %858 }
 0x59e   : > { %v861_v26 = vsel %vm856_vm12, %v859_v25, %v1537_v4  ;;  %vm892_vm12 = vcmask 321792  }
 0x59f   : > { %v868_v27 = vsub.f32 %v861_v26, %v1386_v1 }
 0x5a1   : > { %870 = vrot.lane.b32.xlu0 %v868_v27, %s1315_s27 }
 0x613   : > { %v871_v28 = vpop.permute.xlu0 %870 }
 0x614   : > { %874 = vst.msk [vmem:[%s1497_s12] sm:$0x7f] %vm873_vm13, %v871_v28  ;;  %vm918_vm13 = vcmask 387392  }
 0x61b   : > { %v875_v29 = vld [vmem:[%s1497_s12] sm:$0x7f] }
 0x61c   : > { %884 = vrot.lane.b32.xlu1 %v875_v29, %s1327_s24 }
 0x68e   : > { %v885_v32 = vpop.permute.xlu1 %884 }
 0x68f   : > { %v887_v33 = vsel %vm882_vm8, %v885_v32, %v1537_v4  ;;  %vm970_vm8 = vcmask 518592  }
 0x690   : > { %v894_v34 = vsub.f32 %v887_v33, %v1386_v1 }
 0x692   : > { %896 = vrot.lane.b32.xlu0 %v894_v34, %s1318_s30 }
 0x704   : > { %v897_v35 = vpop.permute.xlu0 %896 }
 0x705   : > { %900 = vst.msk [vmem:[%s1497_s12] sm:$0x7f] %vm899_vm7, %v897_v35  ;;  %vm977_vm7 = vcmask 522688  }
 0x70c   : > { %v901_v36 = vld [vmem:[%s1497_s12] sm:$0x7f] }
 0x70d   : > { %910 = vrot.lane.b32.xlu1 %v901_v36, %s1328_s25 }
 0x77f   : > { %v911_v39 = vpop.permute.xlu1 %910 }
 0x780   : > { %v913_v40 = vsel %vm908_vm15, %v911_v39, %v1537_v4 }
 0x781   : > { %v920_v41 = vsub.f32 %v913_v40, %v1386_v1 }
 0x783   : > { %922 = vrot.lane.b32.xlu0 %v920_v41, %s1320_s5 }
 0x7f5   : > { %v923_v12 = vpop.permute.xlu0 %922 }
 0x7f6   : > { %926 = vst.msk [vmem:[%s1497_s12] sm:$0x7f] %vm925_vm3, %v923_v12 }
 0x7fd   : > { %v927_v42 = vld [vmem:[%s1497_s12] sm:$0x7f] }
 0x7fe   : > { %936 = vrot.lane.b32.xlu1 %v927_v42, %s1329_s26 }
 0x870   : > { %v937_v45 = vpop.permute.xlu1 %936 }
 0x871   : > { %v939_v46 = vsel %vm934_vm1, %v937_v45, %v1537_v4 }
 0x872   : > { %v946_v47 = vsub.f32 %v939_v46, %v1386_v1 }
 0x874   : > { %948 = vrot.lane.b32.xlu0 %v946_v47, %s1322_s13 }
 0x878   : > { %811 = vrot.lane.b32.xlu0 %v1550_v10, %s1316_s28 }
 0x87c   : > { %863 = vrot.lane.b32.xlu0 %v861_v26, %s1315_s27 }
 0x880   : > { %915 = vrot.lane.b32.xlu0 %v913_v40, %s1320_s5 }
 0x8e6   : > { %v949_v48 = vpop.permute.xlu0 %948 }
 0x8e7   : > { %952 = vst.msk [vmem:[%s1497_s12] sm:$0x7f] %vm951_vm2, %v949_v48 }
 0x8ea   : > { %v812_v49 = vpop.permute.xlu0 %811 }
 0x8eb   : > { %815 = vst.msk [vmem:[%s1534_s22] sm:$0x7] %vm814_vm6, %v812_v49 }
 0x8ee   : > { %v953_v51 = vld [vmem:[%s1497_s12] sm:$0x7f]  ;;  %v864_v57 = vpop.permute.xlu0 %863 }
 0x8ef   : > { %962 = vrot.lane.b32.xlu1 %v953_v51, %s1330_s6 }
 0x8f2   : > { %v916_v58 = vpop.permute.xlu0 %915 }
 0x8f3   : > { %837 = vrot.lane.b32.xlu1 %v1561_v19, %s1317_s29 }
 0x8f7   : > { %889 = vrot.lane.b32.xlu1 %v887_v33, %s1318_s30 }
 0x8fb   : > { %941 = vrot.lane.b32.xlu1 %v939_v46, %s1322_s13 }
 0x961   : > { %v963_v54 = vpop.permute.xlu1 %962 }
 0x962   : > { %v965_v55 = vsel %vm960_vm5, %v963_v54, %v1537_v4 }
 0x963   : > { %967 = vrot.lane.b32.xlu0 %v965_v55, %s1323_s14  ;;  %v972_v56 = vsub.f32 %v965_v55, %v1386_v1 }
 0x965   : > { %974 = vrot.lane.b32.xlu1 %v972_v56, %s1323_s14  ;;  %v838_v14 = vpop.permute.xlu1 %837 }
 0x966   : > { %841 = vst.msk [vmem:[%s1534_s22] sm:$0x7] %vm840_vm10, %v838_v14 }
 0x967   : > { %867 = vst.msk [vmem:[%s1534_s22] sm:$0x7] %vm866_vm11, %v864_v57 }
 0x969   : > { %v890_v50 = vpop.permute.xlu1 %889 }
 0x96a   : > { %893 = vst.msk [vmem:[%s1534_s22] sm:$0x7] %vm892_vm12, %v890_v50 }
 0x96b   : > { %919 = vst.msk [vmem:[%s1534_s22] sm:$0x7] %vm918_vm13, %v916_v58 }
 0x96d   : > { %v942_v59 = vpop.permute.xlu1 %941 }
 0x96e   : > { %945 = vst.msk [vmem:[%s1534_s22] sm:$0x7] %vm944_vm14, %v942_v59 }
 0x9d5   : > { %v968_v1 = vpop.permute.xlu0 %967 }
 0x9d6   : > { %971 = vst.msk [vmem:[%s1534_s22] sm:$0x7] %vm970_vm8, %v968_v1 }
 0x9d7   : > { %v975_v60 = vpop.permute.xlu1 %974 }
 0x9d8   : > { %978 = vst.msk [vmem:[%s1497_s12] sm:$0x7f] %vm977_vm7, %v975_v60 }
 0x9d9 PF: > { %s15_s17 = sadd.s32 1, %s1310_s17   ;;  %s1641_s15 = smov %s1306_s16 }
 0x9da   : > { %p12_p5 = scmp.ge.s32.totalorder %s15_s17, 4   ;;  %s1642_s16 = smov %s1644_s18 }
 0x9dc   :  { %14 = sbr.rel (!%p12_p5) target bundleno = 2 (0x2), region = 88 }

</bundles_post_ra>
